<compile_context>
chip_gen: v7x
topology: tpu7x:2x2x1
jax: 0.10.0
libtpu: 0.0.40
codegen_flags: <defaults>
</compile_context>

<pallas_src>
import functools

import jax
import jax.numpy as jnp
from jax import lax
from jax.experimental import pallas as pl
from jax.experimental.pallas import tpu as pltpu

EPS = 1e-5
_LANE = 128


def _round_up(x, m):
    return (x + m - 1) // m * m


def _pick_tile(m_cols, kp, cp, vmem_budget_bytes=20 * 1024 * 1024):
    """Pixel-tile width: as big as possible, but keep >= 2 grid steps when the
    problem allows it (v7x has 2 TensorCores) and fit a conservative VMEM
    budget (double-buffered colsT tile + output tile + resident packed weight)."""
    mp_min = _round_up(m_cols, _LANE)
    tn = 1024                      # cap keeps v7x's 64 MiB VMEM comfortable
    while tn > _LANE and mp_min < 2 * tn:
        tn //= 2
    while tn > _LANE and 4 * (2 * cp * kp + 2 * kp * tn + 2 * cp * tn) > vmem_budget_bytes:
        tn //= 2
    return tn


def _stats_kernel(w_ref, cols_ref, stat_ref, *, lane_chunks):
    """Per-tile channel statistics of the (never-materialized) conv output.

    The parity-packed conv result is computed 128 lanes at a time and reduced
    on the fly; only a (4*Cout, 2*128) stats block is stored:
      lanes [0:128)   -> partial channel sums
      lanes [128:256) -> partial channel sums of squares
    Zero-padded pixel columns contribute exactly 0 to both (stats-neutral).
    """
    w = w_ref[...]
    psum = jnp.zeros((w.shape[0], _LANE), jnp.float32)
    psq = jnp.zeros((w.shape[0], _LANE), jnp.float32)
    for j in range(lane_chunks):                      # static unroll, 128-lane chunks
        blk = jnp.dot(w, cols_ref[:, j * _LANE:(j + 1) * _LANE],
                      preferred_element_type=jnp.float32)
        psum = psum + blk
        psq = psq + blk * blk
    stat_ref[:, 0:_LANE] = psum
    stat_ref[:, _LANE:2 * _LANE] = psq


def _conv_bn_relu_kernel(w_ref, cols_ref, scale_ref, shift_ref, o_ref, *, lane_chunks):
    """Recompute the conv tile chunk-by-chunk and fuse BN scale/shift + ReLU.

    scale_ref / shift_ref are (4*Cout, 128) lane-dense constant blocks, so the
    FMA is a same-shape elementwise op per 128-lane chunk (no masked loads, no
    broadcasts), and every store is an unmasked lane-dense vst.
    """
    w = w_ref[...]
    scale = scale_ref[...]
    shift = shift_ref[...]
    for j in range(lane_chunks):
        blk = jnp.dot(w, cols_ref[:, j * _LANE:(j + 1) * _LANE],
                      preferred_element_type=jnp.float32)
        o_ref[:, j * _LANE:(j + 1) * _LANE] = jnp.maximum(blk * scale + shift, 0.0)


def conv_trans2d_forward(x_nchw, w_pt, bias, gamma, beta):
    """ConvTranspose2d(k=3, s=2, p=1, op=1) + BatchNorm2d(train) + ReLU.

    x_nchw : (N, C_in, H, W)      float32
    w_pt   : (C_in, C_out, 3, 3)  PyTorch ConvTranspose2d weight layout
    bias   : (C_out,)             cancels exactly under training-mode BN
    gamma, beta : (C_out,)
    returns: (N, C_out, 2H, 2W)   NCHW float32
    """
    del bias  # z + b - mean(z + b) == z - mean(z)  (training-mode BN only)

    N, Cin, H, W = x_nchw.shape
    Cout = w_pt.shape[1]
    Ho, Wo = 2 * H, 2 * W
    Kp = 4 * Cin    # packed contraction dim: (input shift, cin)
    Cp = 4 * Cout   # packed output rows:     (output parity, cout)

    # ---- colsT: (4*Cin, N*H*W), pixels on the lane axis ----
    # TODO(synk): build the four (dr,dc) shifted views in-kernel from a halo'd
    # BlockSpec of x instead of materializing this 4x-duplicated array in HBM.
    x = x_nchw.astype(jnp.float32)
    xpad = jnp.pad(x, ((0, 0), (0, 0), (0, 1), (0, 1)))        # out-of-range taps -> 0
    xt = jnp.transpose(xpad, (1, 0, 2, 3))                     # (Cin, N, H+1, W+1)
    views = [xt[:, :, dr:dr + H, dc:dc + W]
             for dr in (0, 1) for dc in (0, 1)]                # each (Cin, N, H, W)
    M_cols = N * H * W
    colsT = jnp.stack(views, axis=0).reshape(Kp, M_cols)

    # ---- parity-packed weight Wp: row (pr*2+pc)*Cout+co, col (dr*2+dc)*Cin+ci ----
    # PyTorch transposed conv: oh = 2*ih - 1 + kh  =>  tap (pr, dr) uses
    # kh = pr + 1 - 2*dr (valid iff 0 <= kh <= 2); same for width.
    wf = w_pt.astype(jnp.float32)
    Wp = jnp.zeros((Cp, Kp), jnp.float32)
    for pr in (0, 1):
        for pc in (0, 1):
            p = pr * 2 + pc
            for dr in (0, 1):
                for dc in (0, 1):
                    kh = pr + 1 - 2 * dr
                    kw = pc + 1 - 2 * dc
                    if 0 <= kh <= 2 and 0 <= kw <= 2:
                        v = dr * 2 + dc
                        Wp = Wp.at[p * Cout:(p + 1) * Cout,
                                   v * Cin:(v + 1) * Cin].set(wf[:, :, kh, kw].T)

    # ---- choose tile first, then zero-pad the pixel axis to a multiple of it ----
    tn = _pick_tile(M_cols, Kp, Cp)
    Mp = _round_up(M_cols, tn)
    if Mp > M_cols:
        colsT = jnp.pad(colsT, ((0, 0), (0, Mp - M_cols)))     # zero pad: stats-neutral
    n_tiles = Mp // tn
    lane_chunks = tn // _LANE

    # ---- Pallas kernel 1: per-tile channel sums / sums-of-squares only ----
    stats = pl.pallas_call(
        functools.partial(_stats_kernel, lane_chunks=lane_chunks),
        grid=(n_tiles,),
        in_specs=[
            pl.BlockSpec((Cp, Kp), lambda i: (0, 0)),   # constant packed weight
            pl.BlockSpec((Kp, tn), lambda i: (0, i)),   # pixel tile of colsT
        ],
        out_specs=pl.BlockSpec((Cp, 2 * _LANE), lambda i: (0, i)),
        out_shape=jax.ShapeDtypeStruct((Cp, n_tiles * 2 * _LANE), jnp.float32),
        compiler_params=pltpu.CompilerParams(dimension_semantics=("parallel",)),
    )(Wp, colsT)

    # ---- fold per-tile partials -> batch stats, precompute BN scale/shift ----
    # NOTE: single-pass E[x^2]-E[x]^2 variance; fine for activation-scale data
    # (bias is dropped, so the conv output is ~zero-mean per channel).
    m_total = float(N * Ho * Wo)
    st = stats.reshape(Cp, n_tiles, 2, _LANE)
    ch_sum = st[:, :, 0, :].sum(axis=(1, 2)).reshape(4, Cout).sum(axis=0)   # (Cout,)
    ch_sq = st[:, :, 1, :].sum(axis=(1, 2)).reshape(4, Cout).sum(axis=0)    # (Cout,)
    mean = ch_sum / m_total
    var = ch_sq / m_total - mean * mean                        # biased (training-mode BN)
    scale = gamma.astype(jnp.float32) * lax.rsqrt(var + EPS)
    shift = beta.astype(jnp.float32) - mean * scale
    scale4 = jnp.broadcast_to(jnp.tile(scale, 4)[:, None], (Cp, _LANE))
    shift4 = jnp.broadcast_to(jnp.tile(shift, 4)[:, None], (Cp, _LANE))

    # ---- Pallas kernel 2: recompute conv + fused BN scale/shift + ReLU ----
    y = pl.pallas_call(
        functools.partial(_conv_bn_relu_kernel, lane_chunks=lane_chunks),
        grid=(n_tiles,),
        in_specs=[
            pl.BlockSpec((Cp, Kp), lambda i: (0, 0)),
            pl.BlockSpec((Kp, tn), lambda i: (0, i)),
            pl.BlockSpec((Cp, _LANE), lambda i: (0, 0)),
            pl.BlockSpec((Cp, _LANE), lambda i: (0, 0)),
        ],
        out_specs=pl.BlockSpec((Cp, tn), lambda i: (0, i)),
        out_shape=jax.ShapeDtypeStruct((Cp, Mp), jnp.float32),
        compiler_params=pltpu.CompilerParams(dimension_semantics=("parallel",)),
    )(Wp, colsT, scale4, shift4)

    # ---- unpack parity-major layout back to NCHW ----
    # TODO(synk): fold this de-interleave into kernel 2 with XLU lane shuffles
    # (or keep the parity-packed layout for the downstream consumer) to avoid
    # the extra XLA read+write of the full output.
    yT = y[:, :M_cols].reshape(2, 2, Cout, N, H, W)            # (pr, pc, co, n, r, c)
    y_nchw = jnp.transpose(yT, (3, 2, 4, 0, 5, 1)).reshape(N, Cout, Ho, Wo)
    return y_nchw


def reference(x_nchw, w_pt, bias, gamma, beta):
    """Pure-JAX reference (XLA dilated conv + training-mode BN + ReLU), with bias."""
    x = jnp.transpose(x_nchw, (0, 2, 3, 1)).astype(jnp.float32)
    w_flip = jnp.transpose(w_pt[:, :, ::-1, ::-1], (2, 3, 0, 1)).astype(jnp.float32)
    conv = lax.conv_general_dilated(
        x, w_flip, window_strides=(1, 1), padding=((1, 2), (1, 2)),
        lhs_dilation=(2, 2), dimension_numbers=('NHWC', 'HWIO', 'NHWC'))
    conv = conv + bias.reshape(1, 1, 1, -1)
    mean = jnp.mean(conv, axis=(0, 1, 2), keepdims=True)
    var = jnp.mean((conv - mean) ** 2, axis=(0, 1, 2), keepdims=True)
    y = (conv - mean) * lax.rsqrt(var + EPS) * gamma.reshape(1, 1, 1, -1) \
        + beta.reshape(1, 1, 1, -1)
    y = jnp.maximum(y, 0.0)
    return jnp.transpose(y, (0, 3, 1, 2))


if __name__ == "__main__":
    key = jax.random.PRNGKey(0)
    k1, k2, k3, k4, k5 = jax.random.split(key, 5)

    N, Cin, H, W = 2, 4, 16, 16
    Cout = 8

    x = jax.random.normal(k1, (N, Cin, H, W), jnp.float32)
    # nn.ConvTranspose2d weight shape: (in_ch, out_ch, kH, kW)
    w = jax.random.normal(k2, (Cin, Cout, 3, 3), jnp.float32) / jnp.sqrt(9.0 * Cin)
    b = 0.05 * jax.random.normal(k3, (Cout,), jnp.float32)
    gamma = 1.0 + 0.1 * jax.random.normal(k4, (Cout,), jnp.float32)
    beta = 0.05 * jax.random.normal(k5, (Cout,), jnp.float32)

    out = jax.block_until_ready(conv_trans2d_forward(x, w, b, gamma, beta))
    ref = jax.block_until_ready(reference(x, w, b, gamma, beta))

    assert out.shape == (N, Cout, 2 * H, 2 * W), out.shape
    max_err = float(jnp.max(jnp.abs(out - ref)))
    assert jnp.allclose(out, ref, atol=1e-4, rtol=1e-4), max_err
    print("KERNEL_OK")
</pallas_src>

<mosaic_0001>
module attributes {stable_mosaic.version = 11 : i64} {
  func.func @_stats_kernel(%arg0: i32, %arg1: memref<32x16xf32, #tpu.memory_space<vmem>>, %arg2: memref<16x256xf32, #tpu.memory_space<vmem>>, %arg3: memref<32x256xf32, #tpu.memory_space<vmem>>) attributes {dimension_semantics = [#tpu.dimension_semantics<parallel>], iteration_bounds = array<i64: 2>, scalar_prefetch = 0 : i64, scratch_operands = 0 : i64, tpu.core_type = #tpu.core_type<tc>, window_params = [{pipeline_mode = #tpu.pipeline_mode<synchronous>, transform_indices = @transform_0, window_bounds = array<i64: 32, 16>}, {transform_indices = @transform_1, window_bounds = array<i64: 16, 256>}, {transform_indices = @transform_2, window_bounds = array<i64: 32, 256>}]} {
    %c0 = arith.constant 0 : index
    %c0_0 = arith.constant 0 : index
    %0 = vector.load %arg1[%c0, %c0_0] : memref<32x16xf32, #tpu.memory_space<vmem>>, vector<32x16xf32>
    %cst = arith.constant 0.000000e+00 : f32
    %1 = vector.broadcast %cst : f32 to vector<32x128xf32>
    %cst_1 = arith.constant 0.000000e+00 : f32
    %2 = vector.broadcast %cst_1 : f32 to vector<32x128xf32>
    %c0_2 = arith.constant 0 : index
    %c0_3 = arith.constant 0 : index
    %3 = vector.load %arg2[%c0_2, %c0_3] : memref<16x256xf32, #tpu.memory_space<vmem>>, vector<16x128xf32>
    %cst_4 = arith.constant dense<0.000000e+00> : vector<32x128xf32>
    %4 = tpu.matmul %0, %3, %cst_4 {dimension_numbers = #tpu.dot_dimension_numbers<[1], [0], [0], [1], [0, 0, 1, 1], [], []>} : vector<32x16xf32>, vector<16x128xf32>, vector<32x128xf32> -> vector<32x128xf32>
    %5 = arith.addf %1, %4 : vector<32x128xf32>
    %6 = arith.mulf %4, %4 : vector<32x128xf32>
    %7 = arith.addf %2, %6 : vector<32x128xf32>
    %c0_5 = arith.constant 0 : index
    %c128 = arith.constant 128 : index
    %8 = vector.load %arg2[%c0_5, %c128] : memref<16x256xf32, #tpu.memory_space<vmem>>, vector<16x128xf32>
    %cst_6 = arith.constant dense<0.000000e+00> : vector<32x128xf32>
    %9 = tpu.matmul %0, %8, %cst_6 {dimension_numbers = #tpu.dot_dimension_numbers<[1], [0], [0], [1], [0, 0, 1, 1], [], []>} : vector<32x16xf32>, vector<16x128xf32>, vector<32x128xf32> -> vector<32x128xf32>
    %10 = arith.addf %5, %9 : vector<32x128xf32>
    %11 = arith.mulf %9, %9 : vector<32x128xf32>
    %12 = arith.addf %7, %11 : vector<32x128xf32>
    %c0_7 = arith.constant 0 : index
    %c0_8 = arith.constant 0 : index
    %13 = vector.load %arg3[%c0_7, %c0_8] : memref<32x256xf32, #tpu.memory_space<vmem>>, vector<32x128xf32>
    tpu.vector_store %arg3[%c0_7, %c0_8], %10 {strides = array<i32>} : memref<32x256xf32, #tpu.memory_space<vmem>>, vector<32x128xf32>,
    %c0_9 = arith.constant 0 : index
    %c128_10 = arith.constant 128 : index
    %14 = vector.load %arg3[%c0_9, %c128_10] : memref<32x256xf32, #tpu.memory_space<vmem>>, vector<32x128xf32>
    tpu.vector_store %arg3[%c0_9, %c128_10], %12 {strides = array<i32>} : memref<32x256xf32, #tpu.memory_space<vmem>>, vector<32x128xf32>,
    return
  }
  func.func @transform_0(%arg0: i32) -> (i32, i32) {
    %c0_i32 = arith.constant 0 : i32
    %c0_i32_0 = arith.constant 0 : i32
    %c0_i32_1 = arith.constant 0 : i32
    return %c0_i32, %c0_i32_0 : i32, i32
  }
  func.func @transform_1(%arg0: i32) -> (i32, i32) {
    %c0_i32 = arith.constant 0 : i32
    %c0_i32_0 = arith.constant 0 : i32
    return %c0_i32, %arg0 : i32, i32
  }
  func.func @transform_2(%arg0: i32) -> (i32, i32) {
    %c0_i32 = arith.constant 0 : i32
    %c0_i32_0 = arith.constant 0 : i32
    return %c0_i32, %arg0 : i32, i32
  }
}

</mosaic_0001>

<bundles_post_ra>
// kernel: tpu_custom_call.1
= control target key start
LH: loop header
LB: loop body
LE: loop exit
PB: predicated region body
PF: predicated region fallthrough
CT: control target
= control target key end

     0   :  { %7 = vsyncpa [#allocation3], 0  ;;  %s896_s0 = inlined_call_operand.vmem [shape: f32[32,16], index: 0, kind: input, shape index: {}]   ;;  %s897_s1 = inlined_call_operand.hbm [shape: f32[16,512], index: 1, kind: input, shape index: {}]   ;;  %s898_s2 = inlined_call_operand.hbm [shape: f32[32,512], index: 2, kind: output, shape index: {}]  }
   0x1   :  { %9 = vsyncpa [#allocation3 + $0x1], 0 }
   0x2   :  { %10 = vsyncpa [#allocation4], 0 }
   0x3   :  { %12 = vsyncpa [#allocation4 + $0x1], 0  ;;  %s711_s9 = smov 0   ;;  %s713_s10 = smov 0  }
   0x4   :  { %s715_s11 = smov 0   ;;  %s717_s12 = smov 0  }
   0x5 LB: > { %s732_s13 = sadd.s32 4294967295, %s686_s12   ;;  %s474_s14 = sadd.s32 4294967294, %s686_s12   ;;  %s686_s12 = sphi %s717_s12, %s912_s12   ;;  %s682_s11 = sphi %s715_s11, %s911_s11   ;;  %s678_s10 = sphi %s713_s10, %s910_s10   ;;  %s674_s9 = sphi %s711_s9, %s909_s9  }
   0x6   : > { %s736_s15 = sadd.s32 1, %s686_s12   ;;  %s46_s16 = sadd.s32 1, %s682_s11 }
   0x7   : > { %s43_s17 = ssub.s32 %s686_s12, %s736_s15  ;;  %p53_p0 = scmp.ne.s32.totalorder %s682_s11, %s678_s10 }
   0x8   : > { %p44_p1 = scmp.eq.s32.totalorder %s43_s17, 0  ;;  %p54_p2 = scmp.eq.s32.totalorder %s686_s12, 0 }
   0x9   : > { %p59_p3 = scmp.ne.s32.totalorder %s678_s10, %s674_s9  ;;  %p60_p4 = scmp.eq.s32.totalorder %s732_s13, 0 }
   0xa   : > { %s748_s18 = scalar_select %p44_p1, %s682_s11, %s46_s16  }
   0xb   : > { %p750_p5 = por %p54_p2, %p53_p0  ;;  %p754_p6 = por %p60_p4, %p59_p3 }
   0xc   : > { %p83_p7 = scmp.eq.s32.totalorder %s732_s13, 1  ;;  %p89_p8 = scmp.eq.s32.totalorder %s474_s14, 1 }
   0xd   : > { %p550_p10 = scmp.lt.s32.totalorder %s686_s12, 2  ;;  %s112_s23 = sand.u32 1, %s682_s11  }
   0xe   : > { %p761_p11 = por %p83_p7, %p53_p0  ;;  %p765_p12 = por %p89_p8, %p59_p3 }
   0xf   : > { %s496_s24 = sshll.u32 %s686_s12, 8  ;;  %s477_s25 = sshll.u32 %s112_s23, 5 }
  0x10   : > { %s902_s21 = scalar_select %p761_p11, 1, 0 }
  0x11   : > { %s903_s22 = scalar_select %p765_p12, 1, 0 }
  0x12   : > { %s774_s28 = scalar_lea.hbm %s897_s1, %s496_s24  ;;  %s116_s29 = scalar_lea.vmem [#allocation2], %s477_s25 }
  0x13   : > { %s123_s30 = sshll.u32 %s116_s29, 4  ;;  %p778_p13 = pnand %p550_p10, %p750_p5  ;;  %s782_s30 = int_to_ptr.vmem [resolvable:$true] %s123_s30 }
  0x14   : > { %s785_s4 = scalar_lea.sflag [#allocation3], %s112_s23  ;;  %s590_s5 = scalar_lea.hbm %s774_s28, 512 }
  0x15   : > { %p591_p1 = scmp.ne.s32.totalorder %s774_s28, %s590_s5  ;;  %p592_p2 = pneg %p778_p13 }
  0x16   : > { %s595_s8 = scalar_lea.hbm %s897_s1, 1024  ;;  %p596_p5 = scmp.lt.u32.totalorder %s774_s28, %s897_s1 }
  0x17   : > { %p593_p3 = pnand %p592_p2, %p591_p1  ;;  %p597_p7 = scmp.lt.u32.totalorder %s595_s8, %s590_s5 }
  0x18   : > { %p599_p10 = scmp.lt.u32.totalorder %s590_s5, %s774_s28 }
  0x19   : > { %p594_p4 = pneg %p593_p3  ;;  %p598_p8 = por %p597_p7, %p596_p5 }
  0x1b   : > { %p600_p9 = por %p599_p10, %p598_p8 }
  0x1d   : > { %p601_p0 = pnand %p600_p9, %p594_p4 }
  0x1f   : > { %604 = shalt.err (!%p601_p0)
}
  0x20   : > { %s605_s17 = scalar_lea.vmem %s782_s30, 512  ;;  %s688_s19 = smov [#allocation2]  }
  0x21   : > { %p606_p1 = scmp.ne.s32.totalorder %s782_s30, %s605_s17  ;;  %s610_s23 = sshll.u32 %s688_s19, 4  ;;  %s611_s23 = int_to_ptr.vmem [resolvable:$false] %s610_s23 }
  0x22   : > { %s612_s24 = scalar_lea.vmem %s611_s23, 1024  ;;  %p613_p11 = scmp.lt.s32.totalorder %s782_s30, %s611_s23 }
  0x23   : > { %p608_p3 = pnand %p606_p1, %p592_p2  ;;  %p614_p5 = scmp.lt.s32.totalorder %s612_s24, %s605_s17 }
  0x25   : > { %p609_p12 = pneg %p608_p3  ;;  %p615_p7 = por %p614_p5, %p613_p11 }
  0x27   : > { %p616_p8 = pnand %p615_p7, %p609_p12 }
  0x29   : > { %619 = shalt.err (!%p616_p8)
}
  0x2a   : > { %s689_s25 = smov 512   ;;  %s690_s26 = smov 256  }
  0x2b   : > { %s691_s27 = smov 16   ;;  %p131_p9 = scmp.lt.s32.totalorder %s686_s12, 3 }
  0x2c   : > { %545 = dma.hbm_to_vmem [thread:$0]  (!%p778_p13), %s774_s28, 512, %s782_s30, %s785_s4, %s689_s25, %s690_s26, %s691_s27  }
  0x2d   : > { %p905_p0 = scmp.ge.s32.totalorder %s686_s12, 1 }
  0x2f   : > { %p132_p2 = pnand %p905_p0, %p131_p9 }
  0x30   : > { %s817_s29 = sand.u32 (!%p132_p2), 1, %s678_s10  }
  0x31   : > { %135 = sbr.rel (%p132_p2) target bundleno = 302 (0x12e), region = 28  ;;  %s481_s5 = sshll.u32 (!%p132_p2), %s817_s29, 5 }
  0x32   : > { %s138_s6 = scalar_lea.sflag (!%p132_p2), [#allocation3], %s817_s29  ;;  %s141_s7 = scalar_lea.vmem (!%p132_p2), [#allocation2], %s481_s5 }
  0x38   : > { %665 = dma.done.wait (%p754_p6), %s138_s6, 512  }
  0x39   : > { %667 = vsyncadd (%p754_p6), %s138_s6, 4294966784  ;;  %vm170_vm0 = vcmask 130048   ;;  %v168_v0 = vld [vmem:[%s141_s7] sm:$0xff]  ;;  %v169_v1 = vld [vmem:[%s141_s7 + $0x10] sm:$0xff]  ;;  %s482_s17 = sshll.u32 %s817_s29, 6  ;;  %s497_s24 = sshll.u32 %s732_s13, 8 }
  0x3a   : > { %v280_v2 = vld [vmem:[%s141_s7 + $0x8] sm:$0xff]  ;;  %v530_v3 = vpack.c.bf16 %v169_v1, %v168_v0  ;;  %v281_v4 = vld [vmem:[%s141_s7 + $0x18] sm:$0xff]  ;;  %v164_v5 = vld [vmem:[%s896_s0] sm:$0xff]  ;;  %s161_s19 = scalar_lea.vmem [#allocation5], %s482_s17  ;;  %s852_s13 = scalar_lea.hbm %s898_s2, %s497_s24 }
  0x3b   : > { %v534_v6 = vpack.c.bf16 %v281_v4, %v280_v2  ;;  %514 = vmatprep.mubr.msk.f32.mxu0 %vm170_vm0, %v164_v5  ;;  %524 = vmatprep.mubr.msk.f32.mxu1 %vm170_vm0, %v164_v5  ;;  %v165_v7 = vld [vmem:[%s896_s0 + $0x8] sm:$0xff]  ;;  %v166_v8 = vld [vmem:[%s896_s0 + $0x10] sm:$0xff]  ;;  %v167_v9 = vld [vmem:[%s896_s0 + $0x18] sm:$0xff]  ;;  %s401_s23 = sshll.u32 %s161_s19, 4  ;;  %s388_s27 = scalar_lea.sflag [#allocation4], %s817_s29  ;;  %s847_s23 = int_to_ptr.vmem [resolvable:$true] %s401_s23 }
  0x3c   : > { %531 = vmatprep.subr.bf16.mxu0 %v530_v3  ;;  %s620_s5 = scalar_lea.vmem %s847_s23, 1024  ;;  %p906_p11 = scmp.ne.s32.totalorder %s902_s21, 0 }
  0x3d   : > { %535 = vmatprep.subr.bf16.mxu1 %v534_v6  ;;  %533 = vmatpush3.bf16.msra.mxu0 %v530_v3  ;;  %p621_p6 = scmp.ne.s32.totalorder %s847_s23, %s620_s5  ;;  %s692_s6 = smov [#allocation5]  }
  0x3e   : > { %537 = vmatpush3.bf16.msra.mxu1 %v534_v6  ;;  %s624_s7 = sshll.u32 %s692_s6, 4  ;;  %s625_s7 = int_to_ptr.vmem [resolvable:$false] %s624_s7 }
  0x3f   : > { %p622_p12 = pnand %p621_p6, %p906_p11  ;;  %s626_s28 = scalar_lea.vmem %s625_s7, 2048 }
  0x40   : > { %515 = vmatmul.mubr.msk.f32.vlgmr.msra.gmra.mrb[0].mxu0 %vm170_vm0, %v165_v7  ;;  %p627_p4 = scmp.lt.s32.totalorder %s847_s23, %s625_s7  ;;  %p628_p10 = scmp.lt.s32.totalorder %s626_s28, %s620_s5 }
  0x41   : > { %525 = vmatmul.mubr.msk.f32.vlgmr.msra.gmra.mrb[0].mxu1 %vm170_vm0, %v165_v7  ;;  %517 = vmatprep.mubr.msk.f32.mxu0 %vm170_vm0, %v166_v8  ;;  %p623_p13 = pneg %p622_p12 }
  0x42   : > { %527 = vmatprep.mubr.msk.f32.mxu1 %vm170_vm0, %v166_v8  ;;  %p629_p1 = por %p628_p10, %p627_p4 }
  0x44   : > { %518 = vmatmul.mubr.msk.f32.gmra.mrb[2].mxu0 %vm170_vm0, %v167_v9  ;;  %p630_p3 = pnand %p629_p1, %p623_p13 }
  0x45   : > { %528 = vmatmul.mubr.msk.f32.gmra.mrb[2].mxu1 %vm170_vm0, %v167_v9 }
 0x113   : > { %v516_v10 = vpop.f32.mrb[0].mxu0 }
 0x114   : > { %v273_v11 = vmul.f32 %v516_v10, %v516_v10  ;;  %v526_v12 = vpop.f32.mrb[0].mxu1  ;;  %v249_v13 = vpop.f32.mrb[1].mxu0 }
 0x115   : > { %v368_v14 = vadd.f32 %v526_v12, %v516_v10  ;;  %v372_v15 = vmul.f32 %v526_v12, %v526_v12  ;;  %v272_v16 = vmul.f32 %v249_v13, %v249_v13  ;;  %v348_v17 = vpop.f32.mrb[1].mxu1 }
 0x116   : > { %v367_v18 = vadd.f32 %v348_v17, %v249_v13  ;;  %v371_v19 = vmul.f32 %v348_v17, %v348_v17 }
 0x117   : > { %v376_v20 = vadd.f32 %v372_v15, %v273_v11  ;;  %380 = vst [vmem:[%s161_s19 + $0x10] sm:$0xff] %v368_v14  ;;  %v519_v21 = vpop.f32.mrb[2].mxu0 }
 0x118   : > { %v375_v22 = vadd.f32 %v371_v19, %v272_v16  ;;  %379 = vst [vmem:[%s161_s19] sm:$0xff] %v367_v18  ;;  %v275_v23 = vmul.f32 %v519_v21, %v519_v21  ;;  %v529_v24 = vpop.f32.mrb[2].mxu1  ;;  %v259_v25 = vpop.f32.mrb[3].mxu0 }
 0x119   : > { %384 = vst [vmem:[%s161_s19 + $0x18] sm:$0xff] %v376_v20  ;;  %v370_v26 = vadd.f32 %v529_v24, %v519_v21  ;;  %v374_v27 = vmul.f32 %v529_v24, %v529_v24  ;;  %v274_v28 = vmul.f32 %v259_v25, %v259_v25  ;;  %v358_v29 = vpop.f32.mrb[3].mxu1 }
 0x11a   : > { %383 = vst [vmem:[%s161_s19 + $0x8] sm:$0xff] %v375_v22  ;;  %v369_v30 = vadd.f32 %v358_v29, %v259_v25  ;;  %v373_v31 = vmul.f32 %v358_v29, %v358_v29 }
 0x11b   : > { %v378_v32 = vadd.f32 %v374_v27, %v275_v23  ;;  %382 = vst [vmem:[%s161_s19 + $0x30] sm:$0xff] %v370_v26 }
 0x11c   : > { %v377_v33 = vadd.f32 %v373_v31, %v274_v28  ;;  %381 = vst [vmem:[%s161_s19 + $0x20] sm:$0xff] %v369_v30 }
 0x11d   : > { %386 = vst [vmem:[%s161_s19 + $0x38] sm:$0xff] %v378_v32 }
 0x11e   : > { %385 = vst [vmem:[%s161_s19 + $0x28] sm:$0xff] %v377_v33 }
 0x11f   : > { %633 = shalt.err (!%p630_p3)
}
 0x120   : > { %s634_s30 = scalar_lea.hbm %s852_s13, 1024  ;;  %s638_s4 = scalar_lea.hbm %s898_s2, 2048 }
 0x121   : > { %p635_p5 = scmp.ne.s32.totalorder %s852_s13, %s634_s30  ;;  %p639_p9 = scmp.lt.u32.totalorder %s852_s13, %s898_s2 }
 0x122   : > { %p640_p0 = scmp.lt.u32.totalorder %s638_s4, %s634_s30  ;;  %p642_p6 = scmp.lt.u32.totalorder %s634_s30, %s852_s13 }
 0x123   : > { %p636_p7 = pnand %p635_p5, %p906_p11 }
 0x124   : > { %p641_p2 = por %p640_p0, %p639_p9 }
 0x125   : > { %p637_p8 = pneg %p636_p7 }
 0x126   : > { %p643_p12 = por %p642_p6, %p641_p2 }
 0x128   : > { %p644_p13 = pnand %p643_p12, %p637_p8 }
 0x12a   : > { %647 = shalt.err (!%p644_p13)
}
 0x12b   : > { %s693_s16 = smov 256   ;;  %s694_s17 = smov 512  }
 0x12c   : > { %s695_s19 = smov 16  }
 0x12d   : > { %540 = dma.vmem_to_hbm [thread:$0]  (%p906_p11), %s847_s23, 1024, %s852_s13, %s388_s27, %s693_s16, %s694_s17, %s695_s19  }
 0x12e PF: > { %s416_s24 = sand.u32 1, %s674_s9   ;;  %p907_p4 = scmp.ne.s32.totalorder %s903_s22, 0 }
 0x12f   : > { %p908_p10 = scmp.ge.s32.totalorder %s686_s12, 2  ;;  %s417_s25 = scalar_lea.sflag [#allocation4], %s416_s24 }
 0x131   : > { %p547_p1 = pnand %p908_p10, %p907_p4 }
 0x133   : > { %669 = dma.done.wait (!%p547_p1), %s417_s25, 1024  }
 0x134   : > { %671 = vsyncadd (!%p547_p1), %s417_s25, 4294966272  ;;  %p15_p3 = scmp.ge.s32.totalorder %s736_s15, 4   ;;  %s909_s9 = smov %s678_s10 }
 0x135   : > { %s910_s10 = smov %s682_s11  ;;  %s911_s11 = smov %s748_s18 }
 0x136   : > { %s912_s12 = smov %s736_s15  ;;  %17 = sbr.rel (!%p15_p3) target bundleno = 5 (0x5), region = 73 }
 0x13d   :  { %422 = vsyncpa [#allocation3], 1 }
 0x13e   :  { %424 = vsyncpa [#allocation3 + $0x1], 1 }
 0x13f   :  { %425 = vsyncpa [#allocation4], 1 }
 0x140   :  { %427 = vsyncpa [#allocation4 + $0x1], 1 }

</bundles_post_ra>
